<compile_context>
chip_gen: v5e
topology: v5e:2x2
jax: 0.10.0
libtpu: 0.0.40
codegen_flags: <defaults>
</compile_context>

<pallas_src>
import functools

import numpy as np
import jax
import jax.numpy as jnp
from jax.experimental import pallas as pl
from jax.experimental.pallas import tpu as pltpu

LEAKY_SLOPE = 0.01   # nn.LeakyReLU default negative_slope
NUM_BRANCHES = 10    # 8 convs + fc1 + fc2
TB_MAX = 256         # batch rows per grid step (fills the 2x256 MXU on v6e/v7x)
K_ALIGN = 128        # lane alignment for the contracted (feature) axis


def _round_up(x, m):
    return ((x + m - 1) // m) * m


# ----------------------------------------------------------------------------
# Pallas kernel: fused (bf16 x, bf16 W) GEMM + f32 bias + LeakyReLU, bf16 store
# ----------------------------------------------------------------------------
def _feature_kernel(x_ref, w_ref, b_ref, feat_ref):
    # x: (tb, D_pad) bf16, w: (D_pad, OUT) bf16, b: (1, OUT) f32
    acc = jnp.dot(x_ref[...], w_ref[...], preferred_element_type=jnp.float32)
    y = acc + b_ref[...]                          # f32 bias add
    y = jnp.where(y >= 0, y, LEAKY_SLOPE * y)     # f32 LeakyReLU
    feat_ref[...] = y.astype(feat_ref.dtype)      # bf16 store (half writeback)


def fused_feature_net(x_bf16, w_bf16, b_f32):
    """x: (B_pad, D_pad) bf16, w: (D_pad, OUT) bf16, b: (1, OUT) f32 -> (B_pad, OUT) bf16."""
    B_pad, D_pad = x_bf16.shape
    OUT = w_bf16.shape[1]
    # Whole batch in one step up to TB_MAX rows; TB_MAX-row tiles beyond that
    # (the wrapper guarantees B_pad % TB_MAX == 0 in that case), so for large
    # batches the "parallel" grid has >= 2 steps and both v7x TensorCores work.
    tb = B_pad if B_pad <= TB_MAX else TB_MAX
    assert B_pad % tb == 0
    grid = (B_pad // tb,)

    cost = pl.CostEstimate(
        flops=2 * B_pad * D_pad * OUT,
        transcendentals=0,
        bytes_accessed=(B_pad * D_pad * 2      # x (bf16)
                        + D_pad * OUT * 2      # W (bf16)
                        + OUT * 4              # b (f32)
                        + B_pad * OUT * 2),    # features (bf16)
    )

    return pl.pallas_call(
        _feature_kernel,
        out_shape=jax.ShapeDtypeStruct((B_pad, OUT), jnp.bfloat16),
        grid=grid,
        in_specs=[
            pl.BlockSpec((tb, D_pad), lambda i: (i, 0)),     # x tile per step
            pl.BlockSpec((D_pad, OUT), lambda i: (0, 0)),    # W resident (constant idx)
            pl.BlockSpec((1, OUT), lambda i: (0, 0)),        # b resident
        ],
        out_specs=pl.BlockSpec((tb, OUT), lambda i: (i, 0)),
        compiler_params=pltpu.CompilerParams(
            dimension_semantics=("parallel",)),
        cost_estimate=cost,
    )(x_bf16, w_bf16, b_f32)


# ----------------------------------------------------------------------------
# Parameter construction (deterministic, PyTorch-default-style uniform init)
# ----------------------------------------------------------------------------
def make_params(key, past_k, tile_total_num, num_rates, action_space, hidden_dim):
    """Per-branch (W, b) with W shape (in_dim, hidden_dim), f32."""
    in_dims = [
        1 * past_k,                   # conv1d1 (throughput)
        num_rates * tile_total_num,   # conv1d2 (next_chunk_size)
        num_rates * tile_total_num,   # conv1d3 (next_chunk_quality)
        1 * tile_total_num,           # conv1d4 (pred_viewport)
        1 * past_k,                   # conv1d5 (viewport_acc)
        1 * past_k,                   # conv1d6 (past_viewport_qualities)
        1 * past_k,                   # conv1d7 (past_quality_variances)
        1 * past_k,                   # conv1d8 (past_rebuffering)
        1,                            # fc1 (buffer)
        action_space,                 # fc2 (action_one_hot)
    ]
    keys = jax.random.split(key, 2 * len(in_dims))
    params = []
    for i, d in enumerate(in_dims):
        bound = 1.0 / (d ** 0.5)
        w = jax.random.uniform(keys[2 * i], (d, hidden_dim), jnp.float32,
                               -bound, bound)
        b = jax.random.uniform(keys[2 * i + 1], (hidden_dim,), jnp.float32,
                               -bound, bound)
        params.append((w, b))
    return params, in_dims


def build_blockdiag_host(params, in_dims, hidden_dim, d_pad, out_dim):
    """One-time, host-side (numpy) block-diagonal weight/bias assembly.

    W has d_pad rows (rows beyond sum(in_dims) are zero, so the zero K-padding
    lanes of x contribute exactly nothing) and out_dim = num_branches*hidden
    columns.  Weights stored in bf16; bias in f32."""
    W = np.zeros((d_pad, out_dim), np.float32)
    b = np.zeros((1, out_dim), np.float32)
    r = 0
    for i, ((w_i, b_i), d) in enumerate(zip(params, in_dims)):
        c = i * hidden_dim
        W[r:r + d, c:c + hidden_dim] = np.asarray(jax.device_get(w_i))
        b[0, c:c + hidden_dim] = np.asarray(jax.device_get(b_i))
        r += d
    return jnp.asarray(W, dtype=jnp.bfloat16), jnp.asarray(b, dtype=jnp.float32)


# ----------------------------------------------------------------------------
# Forward wrapper: flatten + single concat + single bf16 cast, fused Pallas GEMM
# ----------------------------------------------------------------------------
@functools.partial(jax.jit, static_argnames=("hidden_dim", "num_branches"))
def qoe_identifier_feature_net(observation, action_one_hot, w_bf16, b_f32,
                               hidden_dim, num_branches=NUM_BRANCHES):
    B = observation["throughput"].shape[0]
    D_pad = w_bf16.shape[0]
    out_dim = w_bf16.shape[1]
    assert out_dim == hidden_dim * num_branches

    flat = lambda a: a.reshape(B, -1)     # NCW channel-major flatten (f32)
    pieces = [
        flat(observation["throughput"]),
        flat(observation["next_chunk_size"]),
        flat(observation["next_chunk_quality"]),
        flat(observation["pred_viewport"]),
        flat(observation["viewport_acc"]),
        flat(observation["past_viewport_qualities"]),
        flat(observation["past_quality_variances"]),
        flat(observation["past_rebuffering"]),
        flat(observation["buffer"]),
        flat(action_one_hot),
    ]
    D = sum(p.shape[1] for p in pieces)
    if D_pad > D:
        # K padding folded into the single concat (matched by zero W rows).
        pieces.append(jnp.zeros((B, D_pad - D), pieces[0].dtype))
    # ONE concat + ONE bf16 cast (not 10 per-piece casts, no separate pad op).
    x = jnp.concatenate(pieces, axis=-1).astype(jnp.bfloat16)

    # Row padding only needed when the batch is gridded into TB_MAX-row tiles.
    B_pad = B if B <= TB_MAX else _round_up(B, TB_MAX)
    if B_pad != B:
        x = jnp.pad(x, ((0, B_pad - B), (0, 0)))

    feat = fused_feature_net(x, w_bf16, b_f32)
    if B_pad != B:
        feat = feat[:B]

    features = feat                                              # (B, 10*hidden) bf16
    action_one_hot_features = feat[:, (num_branches - 1) * hidden_dim:]
    # Downstream consumers that need f32 can cast; kept bf16 to halve writeback.
    return features, action_one_hot_features


# ----------------------------------------------------------------------------
if __name__ == "__main__":
    # Small, forward-consistent shapes
    B = 2
    PAST_K = 8
    TILE_TOTAL_NUM = 16
    NUM_RATES = 4
    ACTION_SPACE = 6
    HIDDEN_DIM = 32

    root = jax.random.PRNGKey(0)
    k_param, *k_in = jax.random.split(root, 12)

    params, in_dims = make_params(
        k_param, PAST_K, TILE_TOTAL_NUM, NUM_RATES, ACTION_SPACE, HIDDEN_DIM)
    D = sum(in_dims)                       # 191
    D_PAD = _round_up(D, K_ALIGN)          # 256 (MXU-friendly K; zero W rows)
    OUT = HIDDEN_DIM * len(in_dims)        # 320 (natural width, no N padding)

    # One-time host-side weight assembly (not in the per-call path).
    W_bf16, b_f32 = build_blockdiag_host(params, in_dims, HIDDEN_DIM, D_PAD, OUT)

    rnd = lambda k, shp: jax.random.normal(k, shp, jnp.float32)
    observation = {
        "throughput":              rnd(k_in[0], (B, 1, PAST_K)),
        "next_chunk_size":         rnd(k_in[1], (B, NUM_RATES, TILE_TOTAL_NUM)),
        "next_chunk_quality":      rnd(k_in[2], (B, NUM_RATES, TILE_TOTAL_NUM)),
        "pred_viewport":           rnd(k_in[3], (B, 1, TILE_TOTAL_NUM)),
        "viewport_acc":            rnd(k_in[4], (B, 1, PAST_K)),
        "past_viewport_qualities": rnd(k_in[5], (B, 1, PAST_K)),
        "past_quality_variances":  rnd(k_in[6], (B, 1, PAST_K)),
        "past_rebuffering":        rnd(k_in[7], (B, 1, PAST_K)),
        "buffer":                  rnd(k_in[8], (B, 1)),
    }
    action_one_hot = jax.nn.one_hot(
        jax.random.randint(k_in[9], (B,), 0, ACTION_SPACE), ACTION_SPACE
    ).astype(jnp.float32)

    features, aoh_features = qoe_identifier_feature_net(
        observation, action_one_hot, W_bf16, b_f32,
        hidden_dim=HIDDEN_DIM, num_branches=len(in_dims))
    features = jax.block_until_ready(features)
    aoh_features = jax.block_until_ready(aoh_features)

    # Pure-JAX per-branch reference (same math: full-length conv == GEMM), with
    # the same bf16 x/W quantization, f32 accumulate/bias/LeakyReLU, and the
    # result rounded through bf16 exactly like the kernel's output store.
    def ref_branch(x, w, bias):
        xb = x.reshape(x.shape[0], -1).astype(jnp.bfloat16).astype(jnp.float32)
        wb = w.astype(jnp.bfloat16).astype(jnp.float32)
        y = xb @ wb + bias
        return jnp.where(y >= 0, y, LEAKY_SLOPE * y)

    inputs_in_order = [
        observation["throughput"], observation["next_chunk_size"],
        observation["next_chunk_quality"], observation["pred_viewport"],
        observation["viewport_acc"], observation["past_viewport_qualities"],
        observation["past_quality_variances"], observation["past_rebuffering"],
        observation["buffer"], action_one_hot,
    ]
    ref = jnp.concatenate(
        [ref_branch(x, w_i, b_i) for x, (w_i, b_i) in zip(inputs_in_order, params)],
        axis=-1)
    ref = ref.astype(jnp.bfloat16).astype(jnp.float32)

    feat_f32 = features.astype(jnp.float32)
    aoh_f32 = aoh_features.astype(jnp.float32)

    assert features.shape == (B, OUT)
    assert aoh_features.shape == (B, HIDDEN_DIM)
    assert jnp.allclose(feat_f32, ref, atol=1e-2, rtol=1e-2)
    assert jnp.allclose(aoh_f32, ref[:, -HIDDEN_DIM:], atol=1e-2, rtol=1e-2)

    print("KERNEL_OK")
</pallas_src>

<mosaic_0001>
module attributes {stable_mosaic.version = 11 : i64} {
  func.func @_feature_kernel(%arg0: i32, %arg1: memref<2x256xbf16, #tpu.memory_space<vmem>>, %arg2: memref<256x320xbf16, #tpu.memory_space<vmem>>, %arg3: memref<1x320xf32, #tpu.memory_space<vmem>>, %arg4: memref<2x320xbf16, #tpu.memory_space<vmem>>) attributes {dimension_semantics = [#tpu.dimension_semantics<parallel>], iteration_bounds = array<i64: 1>, scalar_prefetch = 0 : i64, scratch_operands = 0 : i64, tpu.core_type = #tpu.core_type<tc>, window_params = [{transform_indices = @transform_0, window_bounds = array<i64: 2, 256>}, {pipeline_mode = #tpu.pipeline_mode<synchronous>, transform_indices = @transform_1, window_bounds = array<i64: 256, 320>}, {pipeline_mode = #tpu.pipeline_mode<synchronous>, transform_indices = @transform_2, window_bounds = array<i64: 1, 320>}, {transform_indices = @transform_3, window_bounds = array<i64: 2, 320>}]} {
    %c0 = arith.constant 0 : index
    %c0_0 = arith.constant 0 : index
    %0 = vector.load %arg1[%c0, %c0_0] : memref<2x256xbf16, #tpu.memory_space<vmem>>, vector<2x256xbf16>
    %c0_1 = arith.constant 0 : index
    %c0_2 = arith.constant 0 : index
    %1 = vector.load %arg2[%c0_1, %c0_2] : memref<256x320xbf16, #tpu.memory_space<vmem>>, vector<256x320xbf16>
    %cst = arith.constant dense<0.000000e+00> : vector<2x320xf32>
    %2 = tpu.matmul %0, %1, %cst {dimension_numbers = #tpu.dot_dimension_numbers<[1], [0], [0], [1], [0, 0, 1, 1], [], []>} : vector<2x256xbf16>, vector<256x320xbf16>, vector<2x320xf32> -> vector<2x320xf32>
    %c0_3 = arith.constant 0 : index
    %c0_4 = arith.constant 0 : index
    %3 = vector.load %arg3[%c0_3, %c0_4] : memref<1x320xf32, #tpu.memory_space<vmem>>, vector<1x320xf32>
    %4 = vector.broadcast %3 : vector<1x320xf32> to vector<2x320xf32>
    %5 = arith.addf %2, %4 : vector<2x320xf32>
    %cst_5 = arith.constant 0.000000e+00 : f32
    %6 = vector.broadcast %cst_5 : f32 to vector<2x320xf32>
    %7 = arith.cmpf oge, %5, %6 : vector<2x320xf32>
    %cst_6 = arith.constant 0.00999999977 : f32
    %8 = vector.broadcast %cst_6 : f32 to vector<2x320xf32>
    %9 = arith.mulf %8, %5 : vector<2x320xf32>
    %10 = arith.select %7, %5, %9 : vector<2x320xi1>, vector<2x320xf32>
    %11 = arith.truncf %10 : vector<2x320xf32> to vector<2x320xbf16>
    %c0_7 = arith.constant 0 : index
    %c0_8 = arith.constant 0 : index
    %12 = vector.load %arg4[%c0_7, %c0_8] : memref<2x320xbf16, #tpu.memory_space<vmem>>, vector<2x320xbf16>
    tpu.vector_store %arg4[%c0_7, %c0_8], %11 {strides = array<i32>} : memref<2x320xbf16, #tpu.memory_space<vmem>>, vector<2x320xbf16>,
    return
  }
  func.func @transform_0(%arg0: i32) -> (i32, i32) {
    %c0_i32 = arith.constant 0 : i32
    %c0_i32_0 = arith.constant 0 : i32
    return %arg0, %c0_i32 : i32, i32
  }
  func.func @transform_1(%arg0: i32) -> (i32, i32) {
    %c0_i32 = arith.constant 0 : i32
    %c0_i32_0 = arith.constant 0 : i32
    %c0_i32_1 = arith.constant 0 : i32
    return %c0_i32, %c0_i32_0 : i32, i32
  }
  func.func @transform_2(%arg0: i32) -> (i32, i32) {
    %c0_i32 = arith.constant 0 : i32
    %c0_i32_0 = arith.constant 0 : i32
    %c0_i32_1 = arith.constant 0 : i32
    return %c0_i32, %c0_i32_0 : i32, i32
  }
  func.func @transform_3(%arg0: i32) -> (i32, i32) {
    %c0_i32 = arith.constant 0 : i32
    %c0_i32_0 = arith.constant 0 : i32
    return %arg0, %c0_i32 : i32, i32
  }
}

</mosaic_0001>

<bundles_post_ra>
// kernel: qoe_identifier_feature_net.1
= control target key start
LH: loop header
LB: loop body
LE: loop exit
PB: predicated region body
PF: predicated region fallthrough
CT: control target
= control target key end

     0   :  { %vm454_vm2 = vcmask 1041409   ;;  %vm443_vm4 = vcmask 1040384   ;;  %vm456_vm6 = vcmask 518146   ;;  %vm447_vm7 = vcmask 1042434   ;;  %s1020_s1 = inlined_call_operand.vmem [shape: bf16[256,320], index: 1, kind: input, shape index: {}]   ;;  %s1021_s0 = inlined_call_operand.vmem [shape: bf16[2,256], index: 0, kind: input, shape index: {}]   ;;  %s1022_s2 = inlined_call_operand.vmem [shape: f32[1,320], index: 2, kind: input, shape index: {}]   ;;  %s1023_s3 = inlined_call_operand.vmem [shape: bf16[2,320], index: 3, kind: output, shape index: {}]  }
   0x1   :  { %v549_v0 = vld [vmem:[%s1020_s1 + $0xa8] sm:$0xf]  ;;  %v677_v1 = vld [vmem:[%s1020_s1 + $0xb0] sm:$0xf0]  ;;  %v676_v5 = vld [vmem:[%s1020_s1 + $0xac] sm:$0xf] }
   0x2   :  { %v645_v2 = vld [vmem:[%s1020_s1 + $0x168] sm:$0xf]  ;;  %v550_v3 = vor.u32 %v677_v1, %v549_v0  ;;  %v701_v4 = vld [vmem:[%s1020_s1 + $0x170] sm:$0xf0]  ;;  %v551_v6 = vld [vmem:[%s1020_s1 + $0xb4] sm:$0xf0] }
   0x3   :  { %v646_v7 = vor.u32 %v701_v4, %v645_v2  ;;  %v554_v8 = vor.u32 %v676_v5, %v551_v6  ;;  %v537_v9 = vld [vmem:[%s1020_s1 + $0x90] sm:$0xf]  ;;  %v674_v10 = vld [vmem:[%s1020_s1 + $0x98] sm:$0xf0]  ;;  %v700_v14 = vld [vmem:[%s1020_s1 + $0x16c] sm:$0xf] }
   0x4   :  { %v633_v11 = vld [vmem:[%s1020_s1 + $0x150] sm:$0xf]  ;;  %349 = vmatpush.bf16.msra.mxu0 %v550_v3  ;;  %v538_v12 = vor.u32 %v674_v10, %v537_v9  ;;  %v698_v13 = vld [vmem:[%s1020_s1 + $0x158] sm:$0xf0]  ;;  %v647_v15 = vld [vmem:[%s1020_s1 + $0x174] sm:$0xf0] }
   0x5   :  { %362 = vmatpush.bf16.msra.mxu1 %v646_v7  ;;  %375 = vmatpush.bf16.msra.mxu2 %v554_v8  ;;  %v634_v16 = vor.u32 %v698_v13, %v633_v11  ;;  %v650_v17 = vor.u32 %v700_v14, %v647_v15  ;;  %v673_v18 = vld [vmem:[%s1020_s1 + $0x94] sm:$0xf]  ;;  %v539_v19 = vld [vmem:[%s1020_s1 + $0x9c] sm:$0xf0]  ;;  %v525_v20 = vld [vmem:[%s1020_s1 + $0x78] sm:$0xf] }
   0x6   :  { %v542_v21 = vor.u32 %v673_v18, %v539_v19  ;;  %v671_v22 = vld [vmem:[%s1020_s1 + $0x80] sm:$0xf0]  ;;  %v621_v23 = vld [vmem:[%s1020_s1 + $0x138] sm:$0xf]  ;;  %v697_v25 = vld [vmem:[%s1020_s1 + $0x154] sm:$0xf] }
   0x7   :  { %v695_v24 = vld [vmem:[%s1020_s1 + $0x140] sm:$0xf0]  ;;  %388 = vmatpush.bf16.msra.mxu3 %v650_v17  ;;  %v635_v26 = vld [vmem:[%s1020_s1 + $0x15c] sm:$0xf0]  ;;  %v670_v27 = vld [vmem:[%s1020_s1 + $0x7c] sm:$0xf]  ;;  %v526_v28 = vor.u32 %v671_v22, %v525_v20 }
   0x8   :  { %350 = vmatpush.bf16.msra.mxu0 %v538_v12  ;;  %v638_v29 = vor.u32 %v697_v25, %v635_v26  ;;  %v527_v30 = vld [vmem:[%s1020_s1 + $0x84] sm:$0xf0]  ;;  %v513_v31 = vld [vmem:[%s1020_s1 + $0x60] sm:$0xf]  ;;  %v668_v32 = vld [vmem:[%s1020_s1 + $0x68] sm:$0xf0]  ;;  %v622_v33 = vor.u32 %v695_v24, %v621_v23 }
   0x9   :  { %363 = vmatpush.bf16.msra.mxu1 %v634_v16  ;;  %376 = vmatpush.bf16.msra.mxu2 %v542_v21  ;;  %v530_v34 = vor.u32 %v670_v27, %v527_v30  ;;  %v609_v35 = vld [vmem:[%s1020_s1 + $0x120] sm:$0xf]  ;;  %v692_v36 = vld [vmem:[%s1020_s1 + $0x128] sm:$0xf0]  ;;  %v694_v37 = vld [vmem:[%s1020_s1 + $0x13c] sm:$0xf]  ;;  %v514_v42 = vor.u32 %v668_v32, %v513_v31 }
   0xa   :  { %v623_v38 = vld [vmem:[%s1020_s1 + $0x144] sm:$0xf0]  ;;  %v667_v39 = vld [vmem:[%s1020_s1 + $0x64] sm:$0xf]  ;;  %v515_v40 = vld [vmem:[%s1020_s1 + $0x6c] sm:$0xf0]  ;;  %v610_v45 = vor.u32 %v692_v36, %v609_v35 }
   0xb   :  { %389 = vmatpush.bf16.msra.mxu3 %v638_v29  ;;  %v626_v41 = vor.u32 %v694_v37, %v623_v38  ;;  %v691_v43 = vld [vmem:[%s1020_s1 + $0x124] sm:$0xf]  ;;  %v611_v44 = vld [vmem:[%s1020_s1 + $0x12c] sm:$0xf0]  ;;  %v518_v46 = vor.u32 %v667_v39, %v515_v40  ;;  %v501_v47 = vld [vmem:[%s1020_s1 + $0x48] sm:$0xf] }
   0xc   :  { %351 = vmatpush.bf16.msra.mxu0 %v526_v28  ;;  %v665_v48 = vld [vmem:[%s1020_s1 + $0x50] sm:$0xf0]  ;;  %v597_v49 = vld [vmem:[%s1020_s1 + $0x108] sm:$0xf]  ;;  %v664_v51 = vld [vmem:[%s1020_s1 + $0x4c] sm:$0xf]  ;;  %v614_v53 = vor.u32 %v691_v43, %v611_v44 }
   0xd   :  { %364 = vmatpush.bf16.msra.mxu1 %v622_v33  ;;  %377 = vmatpush.bf16.msra.mxu2 %v530_v34  ;;  %v689_v50 = vld [vmem:[%s1020_s1 + $0x110] sm:$0xf0]  ;;  %v503_v52 = vld [vmem:[%s1020_s1 + $0x54] sm:$0xf0]  ;;  %v502_v54 = vor.u32 %v665_v48, %v501_v47  ;;  %v688_v55 = vld [vmem:[%s1020_s1 + $0x10c] sm:$0xf] }
   0xe   :  { %v599_v56 = vld [vmem:[%s1020_s1 + $0x114] sm:$0xf0]  ;;  %v598_v57 = vor.u32 %v689_v50, %v597_v49  ;;  %v506_v58 = vor.u32 %v664_v51, %v503_v52  ;;  %v489_v59 = vld [vmem:[%s1020_s1 + $0x30] sm:$0xf]  ;;  %v662_v60 = vld [vmem:[%s1020_s1 + $0x38] sm:$0xf0] }
   0xf   :  { %390 = vmatpush.bf16.msra.mxu3 %v626_v41  ;;  %v585_v61 = vld [vmem:[%s1020_s1 + $0xf0] sm:$0xf]  ;;  %v686_v62 = vld [vmem:[%s1020_s1 + $0xf8] sm:$0xf0]  ;;  %v661_v63 = vld [vmem:[%s1020_s1 + $0x34] sm:$0xf]  ;;  %v602_v1 = vor.u32 %v688_v55, %v599_v56  ;;  %v490_v2 = vor.u32 %v662_v60, %v489_v59 }
  0x10   :  { %352 = vmatpush.bf16.msra.mxu0 %v514_v42  ;;  %v491_v0 = vld [vmem:[%s1020_s1 + $0x3c] sm:$0xf0]  ;;  %v685_v3 = vld [vmem:[%s1020_s1 + $0xf4] sm:$0xf]  ;;  %v586_v5 = vor.u32 %v686_v62, %v585_v61  ;;  %v477_v7 = vld [vmem:[%s1020_s1 + $0x18] sm:$0xf] }
  0x11   :  { %365 = vmatpush.bf16.msra.mxu1 %v610_v45  ;;  %378 = vmatpush.bf16.msra.mxu2 %v518_v46  ;;  %v587_v4 = vld [vmem:[%s1020_s1 + $0xfc] sm:$0xf0]  ;;  %v494_v6 = vor.u32 %v661_v63, %v491_v0  ;;  %v659_v8 = vld [vmem:[%s1020_s1 + $0x20] sm:$0xf0]  ;;  %v573_v9 = vld [vmem:[%s1020_s1 + $0xd8] sm:$0xf] }
  0x12   :  { %v683_v10 = vld [vmem:[%s1020_s1 + $0xe0] sm:$0xf0]  ;;  %v658_v11 = vld [vmem:[%s1020_s1 + $0x1c] sm:$0xf]  ;;  %v479_v12 = vld [vmem:[%s1020_s1 + $0x24] sm:$0xf0]  ;;  %v590_v13 = vor.u32 %v685_v3, %v587_v4  ;;  %v478_v16 = vor.u32 %v659_v8, %v477_v7 }
  0x13   :  { %391 = vmatpush.bf16.msra.mxu3 %v614_v53  ;;  %v465_v14 = vld [vmem:[%s1020_s1] sm:$0xf]  ;;  %v656_v15 = vld [vmem:[%s1020_s1 + $0x8] sm:$0xf0]  ;;  %v682_v18 = vld [vmem:[%s1020_s1 + $0xdc] sm:$0xf]  ;;  %v574_v20 = vor.u32 %v683_v10, %v573_v9  ;;  %v482_v21 = vor.u32 %v658_v11, %v479_v12 }
  0x14   :  { %353 = vmatpush.bf16.msra.mxu0 %v502_v54  ;;  %v561_v17 = vld [vmem:[%s1020_s1 + $0xc0] sm:$0xf]  ;;  %v575_v19 = vld [vmem:[%s1020_s1 + $0xe4] sm:$0xf0]  ;;  %v680_v22 = vld [vmem:[%s1020_s1 + $0xc8] sm:$0xf0]  ;;  %v466_v31 = vor.u32 %v656_v15, %v465_v14 }
  0x15   :  { %366 = vmatpush.bf16.msra.mxu1 %v598_v57  ;;  %379 = vmatpush.bf16.msra.mxu2 %v506_v58  ;;  %v557_v23 = vld [vmem:[%s1020_s1 + $0xb0] sm:$0xf]  ;;  %v14_v24 = vld [vmem:[%s1021_s0] sm:$0x3]  ;;  %v678_v25 = vld [vmem:[%s1020_s1 + $0xb8] sm:$0xf0]  ;;  %v578_v27 = vor.u32 %v682_v18, %v575_v19  ;;  %v562_v34 = vor.u32 %v680_v22, %v561_v17 }
  0x16   :  { %v653_v26 = vld [vmem:[%s1020_s1 + $0x170] sm:$0xf]  ;;  %88 = vst [vmem:[#allocation1] ss:$9 sm:$0xff] %v14_v24  ;;  %v702_v28 = vld [vmem:[%s1020_s1 + $0x178] sm:$0xf0]  ;;  %v558_v35 = vor.u32 %v678_v25, %v557_v23  ;;  %vm455_vm5 = vmor %vm454_vm2, %vm443_vm4 }
  0x17   :  { %392 = vmatpush.bf16.msra.mxu3 %v602_v1  ;;  %v655_v29 = vld [vmem:[%s1020_s1 + $0x4] sm:$0xf]  ;;  %v467_v30 = vld [vmem:[%s1020_s1 + $0xc] sm:$0xf0]  ;;  %v654_v36 = vor.u32 %v702_v28, %v653_v26  ;;  %v545_v38 = vld [vmem:[%s1020_s1 + $0x98] sm:$0xf] }
  0x18   :  { %354 = vmatpush.bf16.msra.mxu0 %v490_v2  ;;  %v679_v32 = vld [vmem:[%s1020_s1 + $0xc4] sm:$0xf]  ;;  %v563_v33 = vld [vmem:[%s1020_s1 + $0xcc] sm:$0xf0]  ;;  %v470_v37 = vor.u32 %v655_v29, %v467_v30  ;;  %v641_v41 = vld [vmem:[%s1020_s1 + $0x158] sm:$0xf] }
  0x19   :  { %367 = vmatpush.bf16.msra.mxu1 %v586_v5  ;;  %380 = vmatpush.bf16.msra.mxu2 %v494_v6  ;;  %v675_v39 = vld [vmem:[%s1020_s1 + $0xa0] sm:$0xf0]  ;;  %v566_v40 = vor.u32 %v679_v32, %v563_v33  ;;  %v533_v46 = vld [vmem:[%s1020_s1 + $0x80] sm:$0xf]  ;;  %v672_v47 = vld [vmem:[%s1020_s1 + $0x88] sm:$0xf0] }
  0x1a   :  { %v699_v42 = vld [vmem:[%s1020_s1 + $0x160] sm:$0xf0]  ;;  %v546_v43 = vor.u32 %v675_v39, %v545_v38  ;;  %v629_v49 = vld [vmem:[%s1020_s1 + $0x140] sm:$0xf]  ;;  %v696_v50 = vld [vmem:[%s1020_s1 + $0x148] sm:$0xf0]  ;;  %v534_v51 = vor.u32 %v672_v47, %v533_v46 }
  0x1b   :  { %393 = vmatpush.bf16.msra.mxu3 %v590_v13  ;;  %v642_v44 = vor.u32 %v699_v42, %v641_v41  ;;  %v630_v52 = vor.u32 %v696_v50, %v629_v49  ;;  %v521_v53 = vld [vmem:[%s1020_s1 + $0x68] sm:$0xf]  ;;  %v669_v54 = vld [vmem:[%s1020_s1 + $0x70] sm:$0xf0]  ;;  %v509_v59 = vld [vmem:[%s1020_s1 + $0x50] sm:$0xf] }
  0x1c   :  { %355 = vmatpush.bf16.msra.mxu0 %v478_v16  ;;  %v617_v55 = vld [vmem:[%s1020_s1 + $0x128] sm:$0xf]  ;;  %v693_v56 = vld [vmem:[%s1020_s1 + $0x130] sm:$0xf0]  ;;  %v522_v57 = vor.u32 %v669_v54, %v521_v53  ;;  %v666_v60 = vld [vmem:[%s1020_s1 + $0x58] sm:$0xf0] }
  0x1d   :  { %368 = vmatpush.bf16.msra.mxu1 %v574_v20  ;;  %381 = vmatpush.bf16.msra.mxu2 %v482_v21  ;;  %v89_v45 = vld [vmem:[#allocation1] sm:$0xff]  ;;  %v90_v48 = vld [vmem:[#allocation1 + $0x9] sm:$0xff]  ;;  %v618_v58 = vor.u32 %v693_v56, %v617_v55  ;;  %v690_v62 = vld [vmem:[%s1020_s1 + $0x118] sm:$0xf0]  ;;  %v510_v63 = vor.u32 %v666_v60, %v509_v59  ;;  %vm451_vm8 = vcmask 1041408  }
  0x1e   :  { %v605_v61 = vld [vmem:[%s1020_s1 + $0x110] sm:$0xf]  ;;  %v497_v1 = vld [vmem:[%s1020_s1 + $0x38] sm:$0xf]  ;;  %v663_v2 = vld [vmem:[%s1020_s1 + $0x40] sm:$0xf0] }
  0x1f   :  { %394 = vmatpush.bf16.msra.mxu3 %v578_v27  ;;  %v606_v0 = vor.u32 %v690_v62, %v605_v61  ;;  %v593_v3 = vld [vmem:[%s1020_s1 + $0xf8] sm:$0xf]  ;;  %v687_v4 = vld [vmem:[%s1020_s1 + $0x100] sm:$0xf0]  ;;  %v498_v5 = vor.u32 %v663_v2, %v497_v1  ;;  %v485_v7 = vld [vmem:[%s1020_s1 + $0x20] sm:$0xf] }
  0x20   :  { %356 = vmatpush.bf16.msra.mxu0 %v466_v31  ;;  %v594_v6 = vor.u32 %v687_v4, %v593_v3  ;;  %v660_v8 = vld [vmem:[%s1020_s1 + $0x28] sm:$0xf0]  ;;  %v581_v9 = vld [vmem:[%s1020_s1 + $0xe0] sm:$0xf]  ;;  %v473_v13 = vld [vmem:[%s1020_s1 + $0x8] sm:$0xf] }
  0x21   :  { %369 = vmatpush.bf16.msra.mxu1 %v562_v34  ;;  %382 = vmatpush.bf16.msra.mxu2 %v470_v37  ;;  %v684_v10 = vld [vmem:[%s1020_s1 + $0xe8] sm:$0xf0]  ;;  %v486_v11 = vor.u32 %v660_v8, %v485_v7  ;;  %v657_v14 = vld [vmem:[%s1020_s1 + $0x10] sm:$0xf0]  ;;  %v569_v15 = vld [vmem:[%s1020_s1 + $0xc8] sm:$0xf] }
  0x22   :  { %v582_v12 = vor.u32 %v684_v10, %v581_v9  ;;  %v681_v16 = vld [vmem:[%s1020_s1 + $0xd0] sm:$0xf0]  ;;  %v474_v17 = vor.u32 %v657_v14, %v473_v13  ;;  %v79_v25 = vld [vmem:[%s1022_s2] sm:$0x7]  ;;  %vm457_vm9 = vmor %vm456_vm6, %vm455_vm5 }
  0x23   :  { %395 = vmatpush.bf16.msra.mxu3 %v566_v40  ;;  %357 = vmatmul.bf16.vlgmr.msra.gmra.mxu0 %v89_v45  ;;  %v570_v18 = vor.u32 %v681_v16, %v569_v15  ;;  %v81_v26 = vperm.slane %v79_v25, 0  ;;  %v82_v27 = vperm.slane %v79_v25, 1 }
  0x24   :  { %401 = vmatpush.bf16.msrb.mxu0 %v558_v35  ;;  %370 = vmatmul.bf16.vlgmr.msra.gmra.mxu1 %v90_v48 }
  0x25   :  { %414 = vmatpush.bf16.msrb.mxu1 %v654_v36  ;;  %383 = vmatmul.bf16.vlgmr.msra.gmra.mxu2 %v89_v45  ;;  %v83_v36 = vperm.slane %v79_v25, 2 }
  0x26   :  { %396 = vmatmul.bf16.vlgmr.msra.gmra.mxu3 %v90_v48 }
  0x28   :  { %402 = vmatpush.bf16.msrb.mxu0 %v546_v43 }
  0x29   :  { %415 = vmatpush.bf16.msrb.mxu1 %v642_v44 }
  0x2c   :  { %403 = vmatpush.bf16.msrb.mxu0 %v534_v51 }
  0x2d   :  { %416 = vmatpush.bf16.msrb.mxu1 %v630_v52 }
  0x30   :  { %404 = vmatpush.bf16.msrb.mxu0 %v522_v57 }
  0x31   :  { %417 = vmatpush.bf16.msrb.mxu1 %v618_v58 }
  0x34   :  { %405 = vmatpush.bf16.msrb.mxu0 %v510_v63 }
  0x35   :  { %418 = vmatpush.bf16.msrb.mxu1 %v606_v0 }
  0x38   :  { %406 = vmatpush.bf16.msrb.mxu0 %v498_v5 }
  0x39   :  { %419 = vmatpush.bf16.msrb.mxu1 %v594_v6 }
  0x3c   :  { %407 = vmatpush.bf16.msrb.mxu0 %v486_v11 }
  0x3d   :  { %420 = vmatpush.bf16.msrb.mxu1 %v582_v12 }
  0x40   :  { %408 = vmatpush.bf16.msrb.mxu0 %v474_v17 }
  0x41   :  { %421 = vmatpush.bf16.msrb.mxu1 %v570_v18 }
  0x43   :  { %409 = vmatmul.bf16.vlgmr.msrb.gmra.mxu0 %v89_v45 }
  0x44   :  { %422 = vmatmul.bf16.vlgmr.msrb.gmra.mxu1 %v90_v48 }
  0xa0   :  { %v358_v19 = vpop.f32.mrf.mxu0 }
  0xa1   :  { %v371_v20 = vpop.f32.mrf.mxu1  ;;  %v359_v30 = vadd.f32 %v358_v19, %v81_v26 }
  0xa3   :  { %v372_v32 = vadd.f32 %v371_v20, %v359_v30 }
  0xa5   :  { %v430_v34 = vmul.f32 0.01, %v372_v32  ;;  %vm427_vm0 = vcmp.ge.f32.partialorder %v372_v32, 0.0 }
  0xa7   :  { %v433_v38 = vsel %vm427_vm0, %v372_v32, %v430_v34 }
  0xa8   :  { %v384_v21 = vpop.f32.mrf.mxu2  ;;  %v360_v22 = vpop.f32.mrf.mxu0 }
  0xa9   :  { %v397_v23 = vpop.f32.mrf.mxu3  ;;  %v373_v24 = vpop.f32.mrf.mxu1  ;;  %v385_v31 = vadd.f32 %v384_v21, %v82_v27 }
  0xab   :  { %v398_v33 = vadd.f32 %v397_v23, %v385_v31 }
  0xad   :  { %v431_v35 = vmul.f32 0.01, %v398_v33  ;;  %vm428_vm1 = vcmp.ge.f32.partialorder %v398_v33, 0.0 }
  0xaf   :  { %v434_v39 = vsel %vm428_vm1, %v398_v33, %v431_v35 }
  0xb0   :  { %v386_v28 = vpop.f32.mrf.mxu2  ;;  %v436_v43 = vpack.c.bf16 %v434_v39, %v433_v38 }
  0xb1   :  { %v399_v29 = vpop.f32.mrf.mxu3 }
  0xb2   :  { %v440_v46 = vrot.slane %v436_v43, 3 }
  0xb4   :  { %v446_v52 = vsel %vm443_vm4, %v436_v43, %v440_v46 }
  0xc0   :  { %v410_v37 = vpop.f32.mrf.mxu0 }
  0xc1   :  { %v411_v40 = vadd.f32 %v410_v37, %v83_v36  ;;  %v423_v41 = vpop.f32.mrf.mxu1 }
  0xc3   :  { %v424_v42 = vadd.f32 %v423_v41, %v411_v40 }
  0xc5   :  { %vm429_vm3 = vcmp.ge.f32.partialorder %v424_v42, 0.0  ;;  %v432_v44 = vmul.f32 0.01, %v424_v42 }
  0xc7   :  { %v435_v45 = vsel %vm429_vm3, %v424_v42, %v432_v44 }
  0xc8   :  { %v437_v47 = vpack.c.bf16 %v435_v45, %v435_v45  ;;  %v412_v48 = vpop.f32.mrf.mxu0 }
  0xc9   :  { %v425_v49 = vpop.f32.mrf.mxu1 }
  0xca   :  { %v441_v50 = vrot.slane %v437_v47, 6  ;;  %v442_v51 = vrot.slane %v437_v47, 1 }
  0xcc   :  { %v450_v53 = vsel %vm447_vm7, %v441_v50, %v442_v51 }
  0xcd   :  { %v452_v54 = vsel %vm451_vm8, %v446_v52, %v450_v53 }
  0xce   :  { %458 = vst.msk [vmem:[%s1023_s3] sm:$0x7] %vm457_vm9, %v452_v54 }

</bundles_post_ra>
